<compile_context>
chip_gen: v5e
topology: v5e:2x2
jax: 0.10.0
libtpu: 0.0.40
codegen_flags: <defaults>
</compile_context>

<pallas_src>
import jax
import jax.numpy as jnp
from jax.experimental import pallas as pl
from jax.experimental.pallas import tpu as pltpu


# ---------------------------------------------------------------------------
# Fixed DAG structure (stands in for LayeredGraph):
#   layers       = [0, 1, 2, 3]
#   layer sizes  = {0: 64, 1: 48, 2: 32, 3: 32}
#   skip targets = {2: [source 0], 3: [source 0, source 1]}
# TODO(synk): the networkx-based LayeredGraph/CachedLayeredGraph construction
# has no Pallas equivalent; replaced by these fixed constants.
# ---------------------------------------------------------------------------
LAYERS = [0, 1, 2, 3]
LAYER_SIZES = {0: 64, 1: 48, 2: 32, 3: 32}
SKIP_TARGETS = {2: [0], 3: [0, 1]}
NUM_CLASSES = 10

LANE = 128
SUBLANE = 8
H = LANE  # every hidden size (64/48/32/32) and num_classes pad up to one 128-lane block


def _round_up(v, m):
    return (v + m - 1) // m * m


def _cdiv(a, b):
    return (a + b - 1) // b


# ---------------------------------------------------------------------------
# Fused forward kernel.  Operand layout (all static, lane-aligned):
#   wf    : (f_pad, 128) bf16                      first-layer weight
#   w_all : (128, 7*128) bf16  = [ w1 | ws02 | ws03 | w2 | ws13 | w3 | wo ]
#   b_all : (1, 8*128)  f32    = [ bf | b1 | bs02 | bs03 | b2 | bs13 | b3 | bo ]
# All dots accumulate in f32 on the MXU; bias add + ReLU in f32 on the VPU.
# ---------------------------------------------------------------------------
def _fused_forward_kernel(x_ref, wf_ref, w_all_ref, b_all_ref, o_ref):
    def mm(h_bf16, w, b):
        return jnp.dot(h_bf16, w, preferred_element_type=jnp.float32) + b

    x = x_ref[...]                                                   # (tile_b, f_pad) bf16

    # layer_first + ReLU
    h0 = jnp.maximum(mm(x, wf_ref[...], b_all_ref[:, 0:H]), 0.0)
    h0 = h0.astype(jnp.bfloat16)

    # h0 group: one wide MXU pass for [main1 | skip0->2 | skip0->3], one ReLU.
    g0 = jnp.maximum(
        mm(h0, w_all_ref[:, 0:3 * H], b_all_ref[:, H:4 * H]), 0.0)
    h1 = g0[:, 0:H]
    s02 = g0[:, H:2 * H]
    s03 = g0[:, 2 * H:3 * H]

    # h1 group: one wide MXU pass for [main2 | skip1->3].
    g1 = jnp.maximum(
        mm(h1.astype(jnp.bfloat16), w_all_ref[:, 3 * H:5 * H],
           b_all_ref[:, 4 * H:6 * H]), 0.0)
    h2 = g1[:, 0:H] + s02                                            # relu(main2) + relu(skip0->2)
    s13 = g1[:, H:2 * H]

    # main layer 3
    m3 = jnp.maximum(
        mm(h2.astype(jnp.bfloat16), w_all_ref[:, 5 * H:6 * H],
           b_all_ref[:, 6 * H:7 * H]), 0.0)
    h3 = m3 + s03 + s13                                              # + relu(skip0->3) + relu(skip1->3)

    # layer_out (no activation)
    o_ref[...] = mm(h3.astype(jnp.bfloat16), w_all_ref[:, 6 * H:7 * H],
                    b_all_ref[:, 7 * H:8 * H])


# ---------------------------------------------------------------------------
# Deterministic parameter / mask construction (replaces torch __init__).
# Weights kept in torch.nn.Linear layout (out_features, in_features) here.
# ---------------------------------------------------------------------------
def _linear_params(key, out_f, in_f):
    kw, kb = jax.random.split(key)
    bound = 1.0 / jnp.sqrt(jnp.float32(in_f))
    w = jax.random.uniform(kw, (out_f, in_f), jnp.float32, -bound, bound)
    b = jax.random.uniform(kb, (out_f,), jnp.float32, -bound, bound)
    return w, b


def init_params(key, input_size):
    params = {}
    keys = jax.random.split(key, 32)
    ki = iter(range(32))

    # layer_first: input_size -> first_layer_size, mask = all ones
    w, b = _linear_params(keys[next(ki)], LAYER_SIZES[0], input_size)
    params["first"] = (w, jnp.ones_like(w), b)

    # layers_main_hidden: size(l-1) -> size(l), masked by graph edges (random here)
    params["main"] = {}
    for l in LAYERS[1:]:
        in_f, out_f = LAYER_SIZES[l - 1], LAYER_SIZES[l]
        w, b = _linear_params(keys[next(ki)], out_f, in_f)
        m = jax.random.bernoulli(keys[next(ki)], 0.7, (out_f, in_f)).astype(jnp.float32)
        params["main"][l] = (w, m, b)

    # skip layers: size(source) -> size(target), masked
    params["skip"] = {}
    for tgt, sources in SKIP_TARGETS.items():
        for src in sources:
            in_f, out_f = LAYER_SIZES[src], LAYER_SIZES[tgt]
            w, b = _linear_params(keys[next(ki)], out_f, in_f)
            m = jax.random.bernoulli(keys[next(ki)], 0.5, (out_f, in_f)).astype(jnp.float32)
            params["skip"][(src, tgt)] = (w, m, b)

    # layer_out: last_layer_size -> num_classes, mask = all ones
    w, b = _linear_params(keys[next(ki)], NUM_CLASSES, LAYER_SIZES[LAYERS[-1]])
    params["out"] = (w, jnp.ones_like(w), b)
    return params


def _fold_pad(w, mask, b, k_pad, n_pad):
    """Fold mask into weight, transpose to (K, N), zero-pad, cast weight to bf16."""
    wt = (w * mask).T                        # (K, N), MXU-native orientation
    k, n = wt.shape
    wt = jnp.pad(wt, ((0, k_pad - k), (0, n_pad - n))).astype(jnp.bfloat16)
    bp = jnp.pad(b, (0, n_pad - n)).astype(jnp.float32)
    return wt, bp


def prepare_fused_params(params, input_size):
    """One-time host-side prep: mask-fold, transpose, pad, concat along N.
    Done outside the hot path."""
    assert all(LAYER_SIZES[l] <= H for l in LAYERS) and NUM_CLASSES <= H
    f_pad = _round_up(int(input_size), LANE)

    wf, bf = _fold_pad(*params["first"], f_pad, H)
    w1, b1 = _fold_pad(*params["main"][1], H, H)
    w2, b2 = _fold_pad(*params["main"][2], H, H)
    w3, b3 = _fold_pad(*params["main"][3], H, H)
    ws02, bs02 = _fold_pad(*params["skip"][(0, 2)], H, H)
    ws03, bs03 = _fold_pad(*params["skip"][(0, 3)], H, H)
    ws13, bs13 = _fold_pad(*params["skip"][(1, 3)], H, H)
    wo, bo = _fold_pad(*params["out"], H, H)

    # Stack the seven K=128 weights along N (same order the kernel slices them).
    w_all = jnp.concatenate([w1, ws02, ws03, w2, ws13, w3, wo], axis=1)    # (128, 896) bf16
    # Pack all eight biases into one lane-contiguous f32 row.
    b_all = jnp.concatenate([bf, b1, bs02, bs03, b2, bs13, b3, bo]).reshape(1, 8 * H)

    return {"wf": wf, "w_all": w_all, "b_all": b_all, "F_pad": f_pad, "C_pad": H}


# ---------------------------------------------------------------------------
# Batch tiling: >=2 grid steps whenever there is enough work for both v7x
# TensorCores; tail padding < 8 rows per tile; tiles capped at `max_tile`.
# ---------------------------------------------------------------------------
def _choose_batch_tiling(batch, max_tile):
    b8 = _round_up(batch, SUBLANE)
    if b8 < 2 * SUBLANE:
        return b8, b8                                  # single tiny step
    n_tiles = max(2, _cdiv(b8, max_tile))              # >=2: megacore sharding
    tile = min(_round_up(_cdiv(b8, n_tiles), SUBLANE), max_tile)
    n_tiles = _cdiv(b8, tile)
    return n_tiles * tile, tile


# ---------------------------------------------------------------------------
# Forward pass (mirrors MaskedDeepDAN.forward) — one fused pallas_call.
# ---------------------------------------------------------------------------
def masked_deep_dan_forward(x, fused, *, batch_tile=512):
    B = x.shape[0]
    x = x.reshape(B, -1).astype(jnp.bfloat16)          # flatten(start_dim=1); bf16 for MXU
    F = x.shape[1]
    f_pad, c_pad = fused["F_pad"], fused["C_pad"]

    b_pad, tile_b = _choose_batch_tiling(B, batch_tile)
    if b_pad != B or f_pad != F:
        x = jnp.pad(x, ((0, b_pad - B), (0, f_pad - F)))   # zero-pad is a semantic no-op

    grid = (b_pad // tile_b,)
    wf, w_all, b_all = fused["wf"], fused["w_all"], fused["b_all"]
    rep = lambda i: (0, 0)                              # weights/biases: same block each step

    out = pl.pallas_call(
        _fused_forward_kernel,
        out_shape=jax.ShapeDtypeStruct((b_pad, c_pad), jnp.float32),
        grid=grid,
        in_specs=[
            pl.BlockSpec((tile_b, f_pad), lambda i: (i, 0)),
            pl.BlockSpec(wf.shape, rep),
            pl.BlockSpec(w_all.shape, rep),
            pl.BlockSpec(b_all.shape, rep),
        ],
        out_specs=pl.BlockSpec((tile_b, c_pad), lambda i: (i, 0)),
        compiler_params=pltpu.CompilerParams(
            # Shard batch tiles across TensorCores only when there is real work.
            dimension_semantics=("parallel",) if grid[0] > 1 else ("arbitrary",),
            # Well under v7x's 64 MiB; actual footprint is a few MiB even at tile_b=512.
            vmem_limit_bytes=32 * 1024 * 1024,
        ),
    )(x, wf, w_all, b_all)

    return out[:B, :NUM_CLASSES]


# ---------------------------------------------------------------------------
# Pure-JAX reference (same math as the torch module, f32 / HIGHEST precision).
# ---------------------------------------------------------------------------
def _reference_forward(x, params):
    B = x.shape[0]
    x = x.reshape(B, -1).astype(jnp.float32)

    def lin(h, w, m, b):
        return jnp.dot(h, (w * m).T, precision=jax.lax.Precision.HIGHEST) + b

    h0 = jax.nn.relu(lin(x, *params["first"]))
    results = {0: h0}
    last = h0
    for l in LAYERS[1:]:
        out = jax.nn.relu(lin(last, *params["main"][l]))
        if l in SKIP_TARGETS:
            for src in SKIP_TARGETS[l]:
                out = out + jax.nn.relu(lin(results[src], *params["skip"][(src, l)]))
        results[l] = out
        last = out
    return lin(last, *params["out"])


# ---------------------------------------------------------------------------
if __name__ == "__main__":
    key = jax.random.PRNGKey(0)
    k_in, k_par = jax.random.split(key)

    # Small NCHW-like input, flattened inside forward: (B, C, H, W) -> (B, C*H*W)
    x = jax.random.normal(k_in, (2, 4, 16, 16), jnp.float32)
    input_size = 4 * 16 * 16

    params = init_params(k_par, input_size)
    fused = prepare_fused_params(params, input_size)

    out = masked_deep_dan_forward(x, fused)
    out = jax.block_until_ready(out)
    assert out.shape == (2, NUM_CLASSES) and out.dtype == jnp.float32

    ref = jax.block_until_ready(_reference_forward(x, params))
    # bf16 weight/activation storage (f32 accumulation) vs. f32 HIGHEST reference.
    assert jnp.allclose(out, ref, rtol=2e-2, atol=2e-2), "kernel mismatch vs reference"

    print("KERNEL_OK")
</pallas_src>

<mosaic_0001>
module attributes {stable_mosaic.version = 11 : i64} {
  func.func @_fused_forward_kernel(%arg0: i32, %arg1: memref<8x1024xbf16, #tpu.memory_space<vmem>>, %arg2: memref<1024x128xbf16, #tpu.memory_space<vmem>>, %arg3: memref<128x896xbf16, #tpu.memory_space<vmem>>, %arg4: memref<1x1024xf32, #tpu.memory_space<vmem>>, %arg5: memref<8x128xf32, #tpu.memory_space<vmem>>) attributes {dimension_semantics = [#tpu.dimension_semantics<arbitrary>], iteration_bounds = array<i64: 1>, scalar_prefetch = 0 : i64, scratch_operands = 0 : i64, tpu.core_type = #tpu.core_type<tc>, window_params = [{transform_indices = @transform_0, window_bounds = array<i64: 8, 1024>}, {pipeline_mode = #tpu.pipeline_mode<synchronous>, transform_indices = @transform_1, window_bounds = array<i64: 1024, 128>}, {pipeline_mode = #tpu.pipeline_mode<synchronous>, transform_indices = @transform_2, window_bounds = array<i64: 128, 896>}, {pipeline_mode = #tpu.pipeline_mode<synchronous>, transform_indices = @transform_3, window_bounds = array<i64: 1, 1024>}, {transform_indices = @transform_4, window_bounds = array<i64: 8, 128>}]} {
    %c0 = arith.constant 0 : index
    %c0_0 = arith.constant 0 : index
    %0 = vector.load %arg1[%c0, %c0_0] : memref<8x1024xbf16, #tpu.memory_space<vmem>>, vector<8x1024xbf16>
    %c0_1 = arith.constant 0 : index
    %c0_2 = arith.constant 0 : index
    %1 = vector.load %arg2[%c0_1, %c0_2] : memref<1024x128xbf16, #tpu.memory_space<vmem>>, vector<1024x128xbf16>
    %c0_3 = arith.constant 0 : index
    %c0_4 = arith.constant 0 : index
    %2 = vector.load %arg4[%c0_3, %c0_4] : memref<1x1024xf32, #tpu.memory_space<vmem>>, vector<1x128xf32>
    %cst = arith.constant dense<0.000000e+00> : vector<8x128xf32>
    %3 = tpu.matmul %0, %1, %cst {dimension_numbers = #tpu.dot_dimension_numbers<[1], [0], [0], [1], [0, 0, 1, 1], [], []>} : vector<8x1024xbf16>, vector<1024x128xbf16>, vector<8x128xf32> -> vector<8x128xf32>
    %4 = vector.broadcast %2 : vector<1x128xf32> to vector<8x128xf32>
    %5 = arith.addf %3, %4 : vector<8x128xf32>
    %cst_5 = arith.constant 0.000000e+00 : f32
    %6 = vector.broadcast %cst_5 : f32 to vector<8x128xf32>
    %7 = arith.maximumf %5, %6 : vector<8x128xf32>
    %8 = arith.truncf %7 : vector<8x128xf32> to vector<8x128xbf16>
    %c0_6 = arith.constant 0 : index
    %c0_7 = arith.constant 0 : index
    %9 = vector.load %arg3[%c0_6, %c0_7] : memref<128x896xbf16, #tpu.memory_space<vmem>>, vector<128x384xbf16>
    %c0_8 = arith.constant 0 : index
    %c128 = arith.constant 128 : index
    %10 = vector.load %arg4[%c0_8, %c128] : memref<1x1024xf32, #tpu.memory_space<vmem>>, vector<1x384xf32>
    %cst_9 = arith.constant dense<0.000000e+00> : vector<8x384xf32>
    %11 = tpu.matmul %8, %9, %cst_9 {dimension_numbers = #tpu.dot_dimension_numbers<[1], [0], [0], [1], [0, 0, 1, 1], [], []>} : vector<8x128xbf16>, vector<128x384xbf16>, vector<8x384xf32> -> vector<8x384xf32>
    %12 = vector.broadcast %10 : vector<1x384xf32> to vector<8x384xf32>
    %13 = arith.addf %11, %12 : vector<8x384xf32>
    %cst_10 = arith.constant 0.000000e+00 : f32
    %14 = vector.broadcast %cst_10 : f32 to vector<8x384xf32>
    %15 = arith.maximumf %13, %14 : vector<8x384xf32>
    %16 = vector.extract_strided_slice %15 {offsets = [0, 0], sizes = [8, 128], strides = [1, 1]} : vector<8x384xf32> to vector<8x128xf32>
    %17 = vector.extract_strided_slice %15 {offsets = [0, 128], sizes = [8, 128], strides = [1, 1]} : vector<8x384xf32> to vector<8x128xf32>
    %18 = vector.extract_strided_slice %15 {offsets = [0, 256], sizes = [8, 128], strides = [1, 1]} : vector<8x384xf32> to vector<8x128xf32>
    %19 = arith.truncf %16 : vector<8x128xf32> to vector<8x128xbf16>
    %c0_11 = arith.constant 0 : index
    %c384 = arith.constant 384 : index
    %20 = vector.load %arg3[%c0_11, %c384] : memref<128x896xbf16, #tpu.memory_space<vmem>>, vector<128x256xbf16>
    %c0_12 = arith.constant 0 : index
    %c512 = arith.constant 512 : index
    %21 = vector.load %arg4[%c0_12, %c512] : memref<1x1024xf32, #tpu.memory_space<vmem>>, vector<1x256xf32>
    %cst_13 = arith.constant dense<0.000000e+00> : vector<8x256xf32>
    %22 = tpu.matmul %19, %20, %cst_13 {dimension_numbers = #tpu.dot_dimension_numbers<[1], [0], [0], [1], [0, 0, 1, 1], [], []>} : vector<8x128xbf16>, vector<128x256xbf16>, vector<8x256xf32> -> vector<8x256xf32>
    %23 = vector.broadcast %21 : vector<1x256xf32> to vector<8x256xf32>
    %24 = arith.addf %22, %23 : vector<8x256xf32>
    %cst_14 = arith.constant 0.000000e+00 : f32
    %25 = vector.broadcast %cst_14 : f32 to vector<8x256xf32>
    %26 = arith.maximumf %24, %25 : vector<8x256xf32>
    %27 = vector.extract_strided_slice %26 {offsets = [0, 0], sizes = [8, 128], strides = [1, 1]} : vector<8x256xf32> to vector<8x128xf32>
    %28 = arith.addf %27, %17 : vector<8x128xf32>
    %29 = vector.extract_strided_slice %26 {offsets = [0, 128], sizes = [8, 128], strides = [1, 1]} : vector<8x256xf32> to vector<8x128xf32>
    %30 = arith.truncf %28 : vector<8x128xf32> to vector<8x128xbf16>
    %c0_15 = arith.constant 0 : index
    %c640 = arith.constant 640 : index
    %31 = vector.load %arg3[%c0_15, %c640] : memref<128x896xbf16, #tpu.memory_space<vmem>>, vector<128x128xbf16>
    %c0_16 = arith.constant 0 : index
    %c768 = arith.constant 768 : index
    %32 = vector.load %arg4[%c0_16, %c768] : memref<1x1024xf32, #tpu.memory_space<vmem>>, vector<1x128xf32>
    %cst_17 = arith.constant dense<0.000000e+00> : vector<8x128xf32>
    %33 = tpu.matmul %30, %31, %cst_17 {dimension_numbers = #tpu.dot_dimension_numbers<[1], [0], [0], [1], [0, 0, 1, 1], [], []>} : vector<8x128xbf16>, vector<128x128xbf16>, vector<8x128xf32> -> vector<8x128xf32>
    %34 = vector.broadcast %32 : vector<1x128xf32> to vector<8x128xf32>
    %35 = arith.addf %33, %34 : vector<8x128xf32>
    %cst_18 = arith.constant 0.000000e+00 : f32
    %36 = vector.broadcast %cst_18 : f32 to vector<8x128xf32>
    %37 = arith.maximumf %35, %36 : vector<8x128xf32>
    %38 = arith.addf %37, %18 : vector<8x128xf32>
    %39 = arith.addf %38, %29 : vector<8x128xf32>
    %40 = arith.truncf %39 : vector<8x128xf32> to vector<8x128xbf16>
    %c0_19 = arith.constant 0 : index
    %c768_20 = arith.constant 768 : index
    %41 = vector.load %arg3[%c0_19, %c768_20] : memref<128x896xbf16, #tpu.memory_space<vmem>>, vector<128x128xbf16>
    %c0_21 = arith.constant 0 : index
    %c896 = arith.constant 896 : index
    %42 = vector.load %arg4[%c0_21, %c896] : memref<1x1024xf32, #tpu.memory_space<vmem>>, vector<1x128xf32>
    %cst_22 = arith.constant dense<0.000000e+00> : vector<8x128xf32>
    %43 = tpu.matmul %40, %41, %cst_22 {dimension_numbers = #tpu.dot_dimension_numbers<[1], [0], [0], [1], [0, 0, 1, 1], [], []>} : vector<8x128xbf16>, vector<128x128xbf16>, vector<8x128xf32> -> vector<8x128xf32>
    %44 = vector.broadcast %42 : vector<1x128xf32> to vector<8x128xf32>
    %45 = arith.addf %43, %44 : vector<8x128xf32>
    %c0_23 = arith.constant 0 : index
    %c0_24 = arith.constant 0 : index
    %46 = vector.load %arg5[%c0_23, %c0_24] : memref<8x128xf32, #tpu.memory_space<vmem>>, vector<8x128xf32>
    tpu.vector_store %arg5[%c0_23, %c0_24], %45 {strides = array<i32>} : memref<8x128xf32, #tpu.memory_space<vmem>>, vector<8x128xf32>,
    return
  }
  func.func @transform_0(%arg0: i32) -> (i32, i32) {
    %c0_i32 = arith.constant 0 : i32
    %c0_i32_0 = arith.constant 0 : i32
    return %arg0, %c0_i32 : i32, i32
  }
  func.func @transform_1(%arg0: i32) -> (i32, i32) {
    %c0_i32 = arith.constant 0 : i32
    %c0_i32_0 = arith.constant 0 : i32
    %c0_i32_1 = arith.constant 0 : i32
    return %c0_i32, %c0_i32_0 : i32, i32
  }
  func.func @transform_2(%arg0: i32) -> (i32, i32) {
    %c0_i32 = arith.constant 0 : i32
    %c0_i32_0 = arith.constant 0 : i32
    %c0_i32_1 = arith.constant 0 : i32
    return %c0_i32, %c0_i32_0 : i32, i32
  }
  func.func @transform_3(%arg0: i32) -> (i32, i32) {
    %c0_i32 = arith.constant 0 : i32
    %c0_i32_0 = arith.constant 0 : i32
    %c0_i32_1 = arith.constant 0 : i32
    return %c0_i32, %c0_i32_0 : i32, i32
  }
  func.func @transform_4(%arg0: i32) -> (i32, i32) {
    %c0_i32 = arith.constant 0 : i32
    %c0_i32_0 = arith.constant 0 : i32
    return %arg0, %c0_i32 : i32, i32
  }
}

</mosaic_0001>

<bundles_post_ra>
// kernel: tpu_custom_call.1
= control target key start
LH: loop header
LB: loop body
LE: loop exit
PB: predicated region body
PF: predicated region fallthrough
CT: control target
= control target key end

     0   :  { %9 = vsyncpa [#allocation3], 0  ;;  %s2057_s0 = inlined_call_operand.hbm [shape: bf16[8,1024], index: 0, kind: input, shape index: {}]   ;;  %s2058_s1 = inlined_call_operand.hbm [shape: bf16[1024,128], index: 1, kind: input, shape index: {}]   ;;  %s2059_s2 = inlined_call_operand.hbm [shape: bf16[128,896], index: 2, kind: input, shape index: {}]   ;;  %s2060_s3 = inlined_call_operand.hbm [shape: f32[1,1024], index: 3, kind: input, shape index: {}]   ;;  %s2061_s4 = inlined_call_operand.hbm [shape: f32[8,128], index: 4, kind: output, shape index: {}]  }
   0x1   :  { %10 = vsyncpa [#allocation6], 0 }
   0x2   :  { %11 = vsyncpa [#allocation9], 0  ;;  %s28_s17 = sshll.u32 %s2058_s1, 4  ;;  %s29_s17 = int_to_ptr.hbm [resolvable:$true] %s28_s17 }
   0x3   :  { %12 = vsyncpa [#allocation4], 0  ;;  %s2000_s18 = smov [#allocation5]   ;;  %s18_s22 = sshll.u32 %s2057_s0, 4  ;;  %s19_s22 = int_to_ptr.hbm [resolvable:$true] %s18_s22 }
   0x4   :  { %s30_s19 = sshll.u32 %s2000_s18, 4  ;;  %s2001_s23 = smov 64   ;;  %s31_s19 = int_to_ptr.vmem [resolvable:$true] %s30_s19 }
   0x5   :  { %s2002_s24 = smov 4   ;;  %s2003_s25 = smov [#allocation2]  }
   0x6   :  { %36 = dma.hbm_to_vmem [thread:$0]  %s29_s17, 8192, %s31_s19, [#allocation6], %s2001_s23, %s2001_s23, %s2002_s24  }
   0x7   :  { %s20_s26 = sshll.u32 %s2003_s25, 4  ;;  %s41_s29 = sshll.u32 %s2059_s2, 4  ;;  %s21_s26 = int_to_ptr.vmem [resolvable:$true] %s20_s26  ;;  %s42_s29 = int_to_ptr.hbm [resolvable:$true] %s41_s29 }
   0x8   :  { %23 = dma.hbm_to_vmem [thread:$0]  %s19_s22, 512, %s21_s26, [#allocation3]  }
   0x9   :  { %s2004_s1 = smov [#allocation7]   ;;  %s55_s0 = sshll.u32 %s2060_s3, 4  ;;  %s56_s0 = int_to_ptr.hbm [resolvable:$true] %s55_s0 }
   0xa   :  { %s43_s30 = sshll.u32 %s2004_s1, 4  ;;  %s2005_s7 = smov 448   ;;  %s44_s30 = int_to_ptr.vmem [resolvable:$true] %s43_s30 }
   0xb   :  { %s2006_s8 = smov 28   ;;  %s2007_s9 = smov [#allocation8]  }
   0xc   :  { %49 = dma.hbm_to_vmem [thread:$0]  %s42_s29, 7168, %s44_s30, [#allocation6], %s2005_s7, %s2005_s7, %s2006_s8  }
   0xd   :  { %s57_s10 = sshll.u32 %s2007_s9, 4  ;;  %s58_s10 = int_to_ptr.vmem [resolvable:$true] %s57_s10 }
   0xe   :  { %60 = dma.hbm_to_vmem [thread:$0]  %s56_s0, 128, %s58_s10, [#allocation9]  }
   0xf   :  { %1992 = dma.done.wait [#allocation3], 512  }
  0x10   :  { %1993 = vsyncadd [#allocation3], 4294966784 }
  0x11   :  { %1994 = dma.done.wait [#allocation6], 15360  }
  0x12   :  { %1995 = vsyncadd [#allocation6], 4294951936 }
  0x13   :  { %1996 = dma.done.wait [#allocation9], 128  }
  0x14   :  { %1997 = vsyncadd [#allocation9], 4294967168  ;;  %v1747_v0 = vld [vmem:[#allocation5 + $0x38] sm:$0xff]  ;;  %v1746_v4 = vld [vmem:[#allocation5 + $0x30] sm:$0xff]  ;;  %s2008_s2 = smov [#allocation10]   ;;  %s1248_s13 = sshll.u32 %s2061_s4, 4  ;;  %s1249_s13 = int_to_ptr.hbm [resolvable:$true] %s1248_s13 }
  0x15   :  { %v1755_v1 = vld [vmem:[#allocation5 + $0x78] sm:$0xff]  ;;  %625 = vmatpush.bf16.msra.mxu0 %v1747_v0  ;;  %v1754_v5 = vld [vmem:[#allocation5 + $0x70] sm:$0xff]  ;;  %v1745_v8 = vld [vmem:[#allocation5 + $0x28] sm:$0xff]  ;;  %s1246_s3 = sshll.u32 %s2008_s2, 4  ;;  %s1247_s3 = int_to_ptr.vmem [resolvable:$true] %s1246_s3 }
  0x16   :  { %v1763_v2 = vld [vmem:[#allocation5 + $0xb8] sm:$0xff]  ;;  %638 = vmatpush.bf16.msra.mxu1 %v1755_v1  ;;  %v1762_v6 = vld [vmem:[#allocation5 + $0xb0] sm:$0xff]  ;;  %v1753_v9 = vld [vmem:[#allocation5 + $0x68] sm:$0xff] }
  0x17   :  { %v1771_v3 = vld [vmem:[#allocation5 + $0xf8] sm:$0xff]  ;;  %651 = vmatpush.bf16.msra.mxu2 %v1763_v2  ;;  %v1770_v7 = vld [vmem:[#allocation5 + $0xf0] sm:$0xff]  ;;  %v1761_v10 = vld [vmem:[#allocation5 + $0xa8] sm:$0xff] }
  0x18   :  { %664 = vmatpush.bf16.msra.mxu3 %v1771_v3  ;;  %v1769_v11 = vld [vmem:[#allocation5 + $0xe8] sm:$0xff]  ;;  %v1744_v12 = vld [vmem:[#allocation5 + $0x20] sm:$0xff]  ;;  %v1743_v16 = vld [vmem:[#allocation5 + $0x18] sm:$0xff] }
  0x19   :  { %626 = vmatpush.bf16.msra.mxu0 %v1746_v4  ;;  %v1752_v13 = vld [vmem:[#allocation5 + $0x60] sm:$0xff]  ;;  %v1751_v17 = vld [vmem:[#allocation5 + $0x58] sm:$0xff]  ;;  %v1742_v20 = vld [vmem:[#allocation5 + $0x10] sm:$0xff] }
  0x1a   :  { %639 = vmatpush.bf16.msra.mxu1 %v1754_v5  ;;  %v1760_v14 = vld [vmem:[#allocation5 + $0xa0] sm:$0xff]  ;;  %v1759_v18 = vld [vmem:[#allocation5 + $0x98] sm:$0xff]  ;;  %v1750_v21 = vld [vmem:[#allocation5 + $0x50] sm:$0xff] }
  0x1b   :  { %652 = vmatpush.bf16.msra.mxu2 %v1762_v6  ;;  %v1768_v15 = vld [vmem:[#allocation5 + $0xe0] sm:$0xff]  ;;  %v1767_v19 = vld [vmem:[#allocation5 + $0xd8] sm:$0xff]  ;;  %v1758_v22 = vld [vmem:[#allocation5 + $0x90] sm:$0xff] }
  0x1c   :  { %665 = vmatpush.bf16.msra.mxu3 %v1770_v7  ;;  %v1766_v23 = vld [vmem:[#allocation5 + $0xd0] sm:$0xff]  ;;  %v1741_v24 = vld [vmem:[#allocation5 + $0x8] sm:$0xff]  ;;  %v77_v29 = vld [vmem:[#allocation2] sm:$0xff] }
  0x1d   :  { %627 = vmatpush.bf16.msra.mxu0 %v1745_v8  ;;  %v1749_v25 = vld [vmem:[#allocation5 + $0x48] sm:$0xff]  ;;  %v1740_v30 = vld [vmem:[#allocation5] sm:$0xff]  ;;  %v217_v33 = vunpack.c.l.b16 %v77_v29  ;;  %v218_v37 = vunpack.c.h.b16 %v77_v29  ;;  %v1779_v38 = vld [vmem:[#allocation5 + $0x138] sm:$0xff] }
  0x1e   :  { %640 = vmatpush.bf16.msra.mxu1 %v1753_v9  ;;  %v1757_v26 = vld [vmem:[#allocation5 + $0x88] sm:$0xff]  ;;  %v1748_v31 = vld [vmem:[#allocation5 + $0x40] sm:$0xff]  ;;  %v1787_v39 = vld [vmem:[#allocation5 + $0x178] sm:$0xff] }
  0x1f   :  { %653 = vmatpush.bf16.msra.mxu2 %v1761_v10  ;;  %v1765_v27 = vld [vmem:[#allocation5 + $0xc8] sm:$0xff]  ;;  %v1756_v34 = vld [vmem:[#allocation5 + $0x80] sm:$0xff]  ;;  %v1795_v40 = vld [vmem:[#allocation5 + $0x1b8] sm:$0xff]  ;;  %v225_v43 = vpack.c.b16 %v217_v33, %v217_v33  ;;  %v226_v45 = vpack.c.b16 %v218_v37, %v218_v37 }
  0x20   :  { %666 = vmatpush.bf16.msra.mxu3 %v1769_v11  ;;  %v78_v28 = vld [vmem:[#allocation2 + $0x8] sm:$0xff]  ;;  %v1764_v35 = vld [vmem:[#allocation5 + $0xc0] sm:$0xff]  ;;  %v1803_v41 = vld [vmem:[#allocation5 + $0x1f8] sm:$0xff] }
  0x21   :  { %628 = vmatpush.bf16.msra.mxu0 %v1744_v12  ;;  %v219_v32 = vunpack.c.l.b16 %v78_v28  ;;  %v220_v36 = vunpack.c.h.b16 %v78_v28  ;;  %v1778_v46 = vld [vmem:[#allocation5 + $0x130] sm:$0xff]  ;;  %v1777_v50 = vld [vmem:[#allocation5 + $0x128] sm:$0xff]  ;;  %v1776_v54 = vld [vmem:[#allocation5 + $0x120] sm:$0xff] }
  0x22   :  { %641 = vmatpush.bf16.msra.mxu1 %v1752_v13  ;;  %v1786_v47 = vld [vmem:[#allocation5 + $0x170] sm:$0xff]  ;;  %v1785_v51 = vld [vmem:[#allocation5 + $0x168] sm:$0xff]  ;;  %v1784_v55 = vld [vmem:[#allocation5 + $0x160] sm:$0xff] }
  0x23   :  { %654 = vmatpush.bf16.msra.mxu2 %v1760_v14  ;;  %v227_v42 = vpack.c.b16 %v219_v32, %v219_v32  ;;  %v228_v44 = vpack.c.b16 %v220_v36, %v220_v36  ;;  %v1794_v48 = vld [vmem:[#allocation5 + $0x1b0] sm:$0xff]  ;;  %v1793_v52 = vld [vmem:[#allocation5 + $0x1a8] sm:$0xff]  ;;  %v1792_v56 = vld [vmem:[#allocation5 + $0x1a0] sm:$0xff] }
  0x24   :  { %667 = vmatpush.bf16.msra.mxu3 %v1768_v15  ;;  %v1802_v49 = vld [vmem:[#allocation5 + $0x1f0] sm:$0xff]  ;;  %v1801_v53 = vld [vmem:[#allocation5 + $0x1e8] sm:$0xff]  ;;  %v1800_v57 = vld [vmem:[#allocation5 + $0x1e0] sm:$0xff] }
  0x25   :  { %629 = vmatpush.bf16.msra.mxu0 %v1743_v16  ;;  %v1775_v58 = vld [vmem:[#allocation5 + $0x118] sm:$0xff]  ;;  %v1774_v62 = vld [vmem:[#allocation5 + $0x110] sm:$0xff]  ;;  %v1773_v2 = vld [vmem:[#allocation5 + $0x108] sm:$0xff] }
  0x26   :  { %642 = vmatpush.bf16.msra.mxu1 %v1751_v17  ;;  %v1783_v59 = vld [vmem:[#allocation5 + $0x158] sm:$0xff]  ;;  %v1782_v63 = vld [vmem:[#allocation5 + $0x150] sm:$0xff]  ;;  %v1781_v3 = vld [vmem:[#allocation5 + $0x148] sm:$0xff] }
  0x27   :  { %655 = vmatpush.bf16.msra.mxu2 %v1759_v18  ;;  %v1791_v60 = vld [vmem:[#allocation5 + $0x198] sm:$0xff]  ;;  %v1790_v0 = vld [vmem:[#allocation5 + $0x190] sm:$0xff]  ;;  %v1789_v5 = vld [vmem:[#allocation5 + $0x188] sm:$0xff] }
  0x28   :  { %668 = vmatpush.bf16.msra.mxu3 %v1767_v19  ;;  %v1799_v61 = vld [vmem:[#allocation5 + $0x1d8] sm:$0xff]  ;;  %v1798_v1 = vld [vmem:[#allocation5 + $0x1d0] sm:$0xff]  ;;  %v1797_v6 = vld [vmem:[#allocation5 + $0x1c8] sm:$0xff] }
  0x29   :  { %630 = vmatpush.bf16.msra.mxu0 %v1742_v20  ;;  %v79_v4 = vld [vmem:[#allocation2 + $0x10] sm:$0xff]  ;;  %v80_v7 = vld [vmem:[#allocation2 + $0x18] sm:$0xff]  ;;  %v1772_v10 = vld [vmem:[#allocation5 + $0x100] sm:$0xff] }
  0x2a   :  { %643 = vmatpush.bf16.msra.mxu1 %v1750_v21  ;;  %v221_v8 = vunpack.c.l.b16 %v79_v4  ;;  %v222_v9 = vunpack.c.h.b16 %v79_v4  ;;  %v1780_v11 = vld [vmem:[#allocation5 + $0x140] sm:$0xff]  ;;  %v223_v12 = vunpack.c.l.b16 %v80_v7  ;;  %v224_v13 = vunpack.c.h.b16 %v80_v7  ;;  %v1602_v20 = vld [vmem:[#allocation7 + $0x188] sm:$0xf]  ;;  %v1590_v29 = vld [vmem:[#allocation7 + $0x150] sm:$0xf] }
  0x2b   :  { %656 = vmatpush.bf16.msra.mxu2 %v1758_v22  ;;  %v1788_v14 = vld [vmem:[#allocation5 + $0x180] sm:$0xff]  ;;  %v1825_v22 = vld [vmem:[#allocation7 + $0x18c] sm:$0xf]  ;;  %v1592_v33 = vld [vmem:[#allocation7 + $0x16c] sm:$0xf0] }
  0x2c   :  { %669 = vmatpush.bf16.msra.mxu3 %v1766_v23  ;;  %v1796_v15 = vld [vmem:[#allocation5 + $0x1c0] sm:$0xff]  ;;  %v229_v16 = vpack.c.b16 %v221_v8, %v221_v8  ;;  %v230_v17 = vpack.c.b16 %v222_v9, %v222_v9  ;;  %v231_v18 = vpack.c.b16 %v223_v12, %v223_v12  ;;  %v232_v19 = vpack.c.b16 %v224_v13, %v224_v13  ;;  %v1550_v7 = vld [vmem:[#allocation7 + $0x78] sm:$0xf]  ;;  %v1812_v8 = vld [vmem:[#allocation7 + $0x90] sm:$0xf0] }
  0x2d   :  { %631 = vmatpush.bf16.msra.mxu0 %v1741_v24  ;;  %v1826_v21 = vld [vmem:[#allocation7 + $0x1a0] sm:$0xf0]  ;;  %v1604_v24 = vld [vmem:[#allocation7 + $0x1a4] sm:$0xf0]  ;;  %v1530_v12 = vld [vmem:[#allocation7 + $0x38] sm:$0xf] }
  0x2e   :  { %644 = vmatpush.bf16.msra.mxu1 %v1749_v25  ;;  %v1603_v23 = vor.u32 %v1826_v21, %v1602_v20  ;;  %v1610_v25 = vld [vmem:[#allocation7 + $0x190] sm:$0xf]  ;;  %v1808_v13 = vld [vmem:[#allocation7 + $0x50] sm:$0xf0] }
  0x2f   :  { %657 = vmatpush.bf16.msra.mxu2 %v1757_v26  ;;  %v1827_v26 = vld [vmem:[#allocation7 + $0x1a8] sm:$0xf0] }
  0x30   :  { %670 = vmatpush.bf16.msra.mxu3 %v1765_v27  ;;  %v1607_v27 = vor.u32 %v1825_v22, %v1604_v24  ;;  %v1611_v28 = vor.u32 %v1827_v26, %v1610_v25  ;;  %v1805_v24 = vld [vmem:[#allocation7 + $0x18] sm:$0xf0]  ;;  %v1804_v25 = vld [vmem:[#allocation7 + $0x4] sm:$0xf] }
  0x31   :  { %632 = vmatpush.bf16.msra.mxu0 %v1740_v30  ;;  %v1823_v30 = vld [vmem:[#allocation7 + $0x168] sm:$0xf0] }
  0x32   :  { %645 = vmatpush.bf16.msra.mxu1 %v1748_v31  ;;  %v1822_v31 = vld [vmem:[#allocation7 + $0x154] sm:$0xf]  ;;  %v1591_v32 = vor.u32 %v1823_v30, %v1590_v29  ;;  %v1526_v29 = vld [vmem:[#allocation7 + $0x8] sm:$0xf]  ;;  %v1806_v30 = vld [vmem:[#allocation7 + $0x20] sm:$0xf0] }
  0x33   :  { %658 = vmatpush.bf16.msra.mxu2 %v1756_v34  ;;  %v1598_v34 = vld [vmem:[#allocation7 + $0x158] sm:$0xf]  ;;  %v1595_v36 = vor.u32 %v1822_v31, %v1592_v33  ;;  %v1527_v33 = vor.u32 %v1806_v30, %v1526_v29  ;;  %v1830_v29 = vld [vmem:[#allocation7 + $0x48] sm:$0xf] }
  0x34   :  { %671 = vmatpush.bf16.msra.mxu3 %v1764_v35  ;;  %633 = vmatmul.bf16.vlgmr.msra.gmra.mxu0 %v225_v43  ;;  %v1824_v35 = vld [vmem:[#allocation7 + $0x170] sm:$0xf0]  ;;  %v1586_v43 = vld [vmem:[#allocation7 + $0x120] sm:$0xf] }
  0x35   :  { %677 = vmatpush.bf16.msrb.mxu0 %v1779_v38  ;;  %646 = vmatmul.bf16.vlgmr.msra.gmra.mxu1 %v226_v45  ;;  %v1599_v37 = vor.u32 %v1824_v35, %v1598_v34  ;;  %v1578_v38 = vld [vmem:[#allocation7 + $0x118] sm:$0xf]  ;;  %v1869_v34 = vld [vmem:[#allocation8] ss:$0 sm:$0xff] }
  0x36   :  { %690 = vmatpush.bf16.msrb.mxu1 %v1787_v39  ;;  %659 = vmatmul.bf16.vlgmr.msra.gmra.mxu2 %v227_v42  ;;  %v1820_v39 = vld [vmem:[#allocation7 + $0x130] sm:$0xf0]  ;;  %v1580_v42 = vld [vmem:[#allocation7 + $0x134] sm:$0xf0] }
  0x37   :  { %703 = vmatpush.bf16.msrb.mxu2 %v1795_v40  ;;  %672 = vmatmul.bf16.vlgmr.msra.gmra.mxu3 %v228_v44  ;;  %v1819_v40 = vld [vmem:[#allocation7 + $0x11c] sm:$0xf] }
  0x38   :  { %716 = vmatpush.bf16.msrb.mxu3 %v1803_v41  ;;  %v1579_v41 = vor.u32 %v1820_v39, %v1578_v38  ;;  %v1821_v44 = vld [vmem:[#allocation7 + $0x138] sm:$0xf0]  ;;  %v1583_v45 = vor.u32 %v1819_v40, %v1580_v42  ;;  %v1842_v38 = vld [vmem:[#allocation7 + $0x198] sm:$0xf] }
  0x39   :  { %678 = vmatpush.bf16.msrb.mxu0 %v1778_v46  ;;  %v1587_v46 = vor.u32 %v1821_v44, %v1586_v43  ;;  %v1662_v42 = vld [vmem:[#allocation7 + $0x15c] sm:$0xf]  ;;  %v1841_v43 = vld [vmem:[#allocation7 + $0x174] sm:$0xf0] }
  0x3a   :  { %691 = vmatpush.bf16.msrb.mxu1 %v1786_v47  ;;  %v1566_v47 = vld [vmem:[#allocation7 + $0xe0] sm:$0xf] }
  0x3b   :  { %704 = vmatpush.bf16.msrb.mxu2 %v1794_v48  ;;  %v1817_v48 = vld [vmem:[#allocation7 + $0xf8] sm:$0xf0] }
  0x3c   :  { %717 = vmatpush.bf16.msrb.mxu3 %v1802_v49  ;;  %v1816_v49 = vld [vmem:[#allocation7 + $0xe4] sm:$0xf] }
  0x3d   :  { %679 = vmatpush.bf16.msrb.mxu0 %v1777_v50  ;;  %v1568_v50 = vld [vmem:[#allocation7 + $0xfc] sm:$0xf0] }
  0x3e   :  { %692 = vmatpush.bf16.msrb.mxu1 %v1785_v51  ;;  %v1574_v51 = vld [vmem:[#allocation7 + $0xe8] sm:$0xf] }
  0x3f   :  { %705 = vmatpush.bf16.msrb.mxu2 %v1793_v52  ;;  %v1818_v52 = vld [vmem:[#allocation7 + $0x100] sm:$0xf0] }
  0x40   :  { %718 = vmatpush.bf16.msrb.mxu3 %v1801_v53  ;;  %v1567_v53 = vor.u32 %v1817_v48, %v1566_v47  ;;  %v1663_v48 = vor.u32 %v1841_v43, %v1662_v42  ;;  %v1850_v43 = vld [vmem:[#allocation7 + $0x17c] sm:$0xf0] }
  0x41   :  { %680 = vmatpush.bf16.msrb.mxu0 %v1776_v54  ;;  %v1571_v54 = vor.u32 %v1816_v49, %v1568_v50  ;;  %v1654_v50 = vld [vmem:[#allocation7 + $0x124] sm:$0xf] }
  0x42   :  { %693 = vmatpush.bf16.msrb.mxu1 %v1784_v55  ;;  %v1575_v55 = vor.u32 %v1818_v52, %v1574_v51  ;;  %v1839_v51 = vld [vmem:[#allocation7 + $0x13c] sm:$0xf0]  ;;  %v1838_v52 = vld [vmem:[#allocation7 + $0x128] sm:$0xf] }
  0x43   :  { %706 = vmatpush.bf16.msrb.mxu2 %v1792_v56  ;;  %v1554_v56 = vld [vmem:[#allocation7 + $0xa8] sm:$0xf] }
  0x44   :  { %719 = vmatpush.bf16.msrb.mxu3 %v1800_v57  ;;  %v1814_v57 = vld [vmem:[#allocation7 + $0xc0] sm:$0xf0] }
  0x45   :  { %681 = vmatpush.bf16.msrb.mxu0 %v1775_v58  ;;  %v1813_v58 = vld [vmem:[#allocation7 + $0xac] sm:$0xf] }
  0x46   :  { %694 = vmatpush.bf16.msrb.mxu1 %v1783_v59  ;;  %v1555_v59 = vor.u32 %v1814_v57, %v1554_v56  ;;  %v1646_v57 = vld [vmem:[#allocation7 + $0xec] sm:$0xf] }
  0x47   :  { %707 = vmatpush.bf16.msrb.mxu2 %v1791_v60  ;;  %v1556_v60 = vld [vmem:[#allocation7 + $0xc4] sm:$0xf0] }
  0x48   :  { %720 = vmatpush.bf16.msrb.mxu3 %v1799_v61  ;;  %v1562_v61 = vld [vmem:[#allocation7 + $0xb0] sm:$0xf] }
  0x49   :  { %682 = vmatpush.bf16.msrb.mxu0 %v1774_v62  ;;  %v1815_v62 = vld [vmem:[#allocation7 + $0xc8] sm:$0xf0] }
  0x4a   :  { %695 = vmatpush.bf16.msrb.mxu1 %v1782_v63  ;;  %v1559_v63 = vor.u32 %v1813_v58, %v1556_v60  ;;  %v1837_v58 = vld [vmem:[#allocation7 + $0x104] sm:$0xf0]  ;;  %v1648_v60 = vld [vmem:[#allocation7 + $0x108] sm:$0xf0] }
  0x4b   :  { %708 = vmatpush.bf16.msrb.mxu2 %v1790_v0  ;;  %v1563_v0 = vor.u32 %v1815_v62, %v1562_v61  ;;  %v1647_v62 = vor.u32 %v1837_v58, %v1646_v57 }
  0x4c   :  { %721 = vmatpush.bf16.msrb.mxu3 %v1798_v1  ;;  %v1542_v1 = vld [vmem:[#allocation7 + $0x70] sm:$0xf] }
  0x4d   :  { %683 = vmatpush.bf16.msrb.mxu0 %v1773_v2  ;;  %v1811_v2 = vld [vmem:[#allocation7 + $0x88] sm:$0xf0] }
  0x4e   :  { %696 = vmatpush.bf16.msrb.mxu1 %v1781_v3  ;;  %v1810_v3 = vld [vmem:[#allocation7 + $0x74] sm:$0xf] }
  0x4f   :  { %709 = vmatpush.bf16.msrb.mxu2 %v1789_v5  ;;  %v1543_v5 = vor.u32 %v1811_v2, %v1542_v1  ;;  %v1835_v1 = vld [vmem:[#allocation7 + $0xcc] sm:$0xf0]  ;;  %v1834_v2 = vld [vmem:[#allocation7 + $0xb8] sm:$0xf] }
  0x50   :  { %722 = vmatpush.bf16.msrb.mxu3 %v1797_v6  ;;  %v1544_v6 = vld [vmem:[#allocation7 + $0x8c] sm:$0xf0] }
  0x51   :  { %684 = vmatpush.bf16.msrb.mxu0 %v1772_v10  ;;  %v1547_v10 = vor.u32 %v1810_v3, %v1544_v6  ;;  %v1640_v3 = vld [vmem:[#allocation7 + $0xd0] sm:$0xf0] }
  0x52   :  { %697 = vmatpush.bf16.msrb.mxu1 %v1780_v11  ;;  %v1551_v11 = vor.u32 %v1812_v8, %v1550_v7  ;;  %v1643_v8 = vor.u32 %v1834_v2, %v1640_v3  ;;  %v1846_v2 = vld [vmem:[#allocation7 + $0x9c] sm:$0xf0] }
  0x53   :  { %710 = vmatpush.bf16.msrb.mxu2 %v1788_v14  ;;  %v1807_v14 = vld [vmem:[#allocation7 + $0x3c] sm:$0xf] }
  0x54   :  { %723 = vmatpush.bf16.msrb.mxu3 %v1796_v15  ;;  %685 = vmatmul.bf16.vlgmr.msrb.gmra.mxu0 %v229_v16  ;;  %v1531_v15 = vor.u32 %v1808_v13, %v1530_v12  ;;  %v1532_v16 = vld [vmem:[#allocation7 + $0x54] sm:$0xf0]  ;;  %v1832_v12 = vld [vmem:[#allocation7 + $0x80] sm:$0xf]  ;;  %v1632_v13 = vld [vmem:[#allocation7 + $0x98] sm:$0xf0] }
  0x55   :  { %698 = vmatmul.bf16.vlgmr.msrb.gmra.mxu1 %v230_v17  ;;  %899 = vmatpush.bf16.msra.mxu0 %v1603_v23  ;;  %v1538_v17 = vld [vmem:[#allocation7 + $0x40] sm:$0xf] }
  0x56   :  { %711 = vmatmul.bf16.vlgmr.msrb.gmra.mxu2 %v231_v18  ;;  %912 = vmatpush.bf16.msra.mxu1 %v1607_v27  ;;  %v1809_v18 = vld [vmem:[#allocation7 + $0x58] sm:$0xf0]  ;;  %v1518_v23 = vld [vmem:[#allocation7] sm:$0xf] }
  0x57   :  { %724 = vmatmul.bf16.vlgmr.msrb.gmra.mxu3 %v232_v19  ;;  %925 = vmatpush.bf16.msra.mxu2 %v1611_v28  ;;  %v1535_v19 = vor.u32 %v1807_v14, %v1532_v16  ;;  %v1539_v20 = vor.u32 %v1809_v18, %v1538_v17  ;;  %v1519_v27 = vor.u32 %v1805_v24, %v1518_v23  ;;  %v1520_v28 = vld [vmem:[#allocation7 + $0x1c] sm:$0xf0] }
  0x59   :  { %900 = vmatpush.bf16.msra.mxu0 %v1591_v32  ;;  %v1523_v32 = vor.u32 %v1804_v25, %v1520_v28  ;;  %v1831_v28 = vld [vmem:[#allocation7 + $0x5c] sm:$0xf0] }
  0x5a   :  { %913 = vmatpush.bf16.msra.mxu1 %v1595_v36  ;;  %v1670_v36 = vld [vmem:[#allocation7 + $0x194] sm:$0xf] }
  0x5b   :  { %926 = vmatpush.bf16.msra.mxu2 %v1599_v37  ;;  %v1843_v37 = vld [vmem:[#allocation7 + $0x1ac] sm:$0xf0] }
  0x5c   :  { %v1671_v40 = vor.u32 %v1843_v37, %v1670_v36  ;;  %v1616_v37 = vld [vmem:[#allocation7 + $0x28] sm:$0xf0] }
  0x5d   :  { %901 = vmatpush.bf16.msra.mxu0 %v1579_v41  ;;  %v1672_v41 = vld [vmem:[#allocation7 + $0x1b0] sm:$0xf0] }
  0x5e   :  { %914 = vmatpush.bf16.msra.mxu1 %v1583_v45  ;;  %v1675_v44 = vor.u32 %v1842_v38, %v1672_v41  ;;  %v1840_v45 = vld [vmem:[#allocation7 + $0x160] sm:$0xf]  ;;  %1044 = vmatpush.bf16.msra.mxu3 %v1671_v40  ;;  %v1851_v40 = vld [vmem:[#allocation7 + $0x1b4] sm:$0xf0]  ;;  %v1702_v41 = vld [vmem:[#allocation7 + $0x164] sm:$0xf] }
  0x5f   :  { %927 = vmatpush.bf16.msra.mxu2 %v1587_v46  ;;  %v1664_v46 = vld [vmem:[#allocation7 + $0x178] sm:$0xf0] }
  0x60   :  { %v1667_v49 = vor.u32 %v1840_v45, %v1664_v46  ;;  %v1698_v45 = vld [vmem:[#allocation7 + $0x12c] sm:$0xf]  ;;  %v1849_v46 = vld [vmem:[#allocation7 + $0x144] sm:$0xf0] }
  0x61   :  { %902 = vmatpush.bf16.msra.mxu0 %v1567_v53  ;;  %v1656_v53 = vld [vmem:[#allocation7 + $0x140] sm:$0xf0] }
  0x62   :  { %915 = vmatpush.bf16.msra.mxu1 %v1571_v54  ;;  %1045 = vmatpush.bf16.msra.mxu3 %v1663_v48  ;;  %v1659_v56 = vor.u32 %v1838_v52, %v1656_v53  ;;  %v1694_v48 = vld [vmem:[#allocation7 + $0xf4] sm:$0xf] }
  0x63   :  { %928 = vmatpush.bf16.msra.mxu2 %v1575_v55  ;;  %v1655_v55 = vor.u32 %v1839_v51, %v1654_v50  ;;  %v2046_v50 = vld [vmem:[#allocation8 + $0x1] sm:$0x7] }
  0x64   :  { %v765_v52 = vperm.slane %v2046_v50, 0 }
  0x65   :  { %903 = vmatpush.bf16.msra.mxu0 %v1555_v59  ;;  %v1836_v59 = vld [vmem:[#allocation7 + $0xf0] sm:$0xf] }
  0x66   :  { %916 = vmatpush.bf16.msra.mxu1 %v1559_v63  ;;  %1046 = vmatpush.bf16.msra.mxu3 %v1655_v55  ;;  %v1651_v63 = vor.u32 %v1836_v59, %v1648_v60 }
  0x67   :  { %929 = vmatpush.bf16.msra.mxu2 %v1563_v0  ;;  %v1638_v0 = vld [vmem:[#allocation7 + $0xb4] sm:$0xf] }
  0x68   :  { %v1639_v7 = vor.u32 %v1835_v1, %v1638_v0  ;;  %v1686_v1 = vld [vmem:[#allocation7 + $0x84] sm:$0xf] }
  0x69   :  { %904 = vmatpush.bf16.msra.mxu0 %v1543_v5  ;;  %v1687_v3 = vor.u32 %v1846_v2, %v1686_v1 }
  0x6a   :  { %917 = vmatpush.bf16.msra.mxu1 %v1547_v10  ;;  %1047 = vmatpush.bf16.msra.mxu3 %v1647_v62  ;;  %v1833_v10 = vld [vmem:[#allocation7 + $0x94] sm:$0xf0]  ;;  %v1690_v62 = vld [vmem:[#allocation7 + $0xbc] sm:$0xf] }
  0x6b   :  { %930 = vmatpush.bf16.msra.mxu2 %v1551_v11 }
  0x6d   :  { %905 = vmatpush.bf16.msra.mxu0 %v1531_v15  ;;  %v1635_v15 = vor.u32 %v1832_v12, %v1632_v13  ;;  %v1734_v12 = vld [vmem:[#allocation7 + $0x168] sm:$0xf] }
  0x6e   :  { %918 = vmatpush.bf16.msra.mxu1 %v1535_v19  ;;  %1048 = vmatpush.bf16.msra.mxu3 %v1639_v7  ;;  %v1678_v7 = vld [vmem:[#allocation7 + $0x14] sm:$0xf] }
  0x6f   :  { %931 = vmatpush.bf16.msra.mxu2 %v1539_v20 }
  0x71   :  { %906 = vmatpush.bf16.msra.mxu0 %v1519_v27  ;;  %v1622_v27 = vld [vmem:[#allocation7 + $0x44] sm:$0xf] }
  0x72   :  { %919 = vmatpush.bf16.msra.mxu1 %v1523_v32  ;;  %v1623_v30 = vor.u32 %v1831_v28, %v1622_v27  ;;  %v958_v27 = vld [vmem:[#allocation8 + $0x4] sm:$0x3] }
  0x73   :  { %932 = vmatpush.bf16.msra.mxu2 %v1527_v33  ;;  %v1614_v33 = vld [vmem:[#allocation7 + $0xc] sm:$0xf]  ;;  %v960_v28 = vperm.slane %v958_v27, 0 }
  0x75   :  { %1057 = vmatpush.bf16.msrb.mxu0 %v1675_v44  ;;  %v1703_v44 = vor.u32 %v1850_v43, %v1702_v41  ;;  %v1714_v41 = vld [vmem:[#allocation7 + $0x50] sm:$0xf] }
  0x79   :  { %1058 = vmatpush.bf16.msrb.mxu0 %v1667_v49  ;;  %v1848_v49 = vld [vmem:[#allocation7 + $0x10c] sm:$0xf0] }
  0x7a   :  { %v1695_v51 = vor.u32 %v1848_v49, %v1694_v48  ;;  %v961_v48 = vperm.slane %v958_v27, 1  ;;  %v1870_v49 = vld [vmem:[#allocation8 + $0x6] ss:$0 sm:$0xff] }
  0x7d   :  { %1059 = vmatpush.bf16.msrb.mxu0 %v1659_v56 }
  0x81   :  { %1060 = vmatpush.bf16.msrb.mxu0 %v1651_v63  ;;  %v1847_v63 = vld [vmem:[#allocation7 + $0xd4] sm:$0xf0] }
  0x82   :  { %v1691_v0 = vor.u32 %v1847_v63, %v1690_v62  ;;  %v1871_v63 = vld [vmem:[#allocation8 + $0x7] ss:$0 sm:$0xff] }
  0x85   :  { %1061 = vmatpush.bf16.msrb.mxu0 %v1643_v8  ;;  %v1844_v8 = vld [vmem:[#allocation7 + $0x2c] sm:$0xf0] }
  0x89   :  { %1062 = vmatpush.bf16.msrb.mxu0 %v1635_v15 }
  0xb1   :  { %v634_v4 = vpop.f32.mrf.mxu0 }
  0xb2   :  { %v647_v9 = vpop.f32.mrf.mxu1  ;;  %v635_v47 = vadd.f32 %v1869_v34, %v634_v4  ;;  %v1829_v34 = vld [vmem:[#allocation7 + $0x24] sm:$0xf0] }
  0xb3   :  { %v1615_v36 = vor.u32 %v1829_v34, %v1614_v33 }
  0xb4   :  { %v648_v54 = vadd.f32 %v647_v9, %v635_v47  ;;  %v1630_v9 = vld [vmem:[#allocation7 + $0x7c] sm:$0xf]  ;;  %v1699_v47 = vor.u32 %v1849_v46, %v1698_v45  ;;  %v1852_v45 = vld [vmem:[#allocation7 + $0x30] sm:$0xf0] }
  0xb5   :  { %v1631_v14 = vor.u32 %v1833_v10, %v1630_v9  ;;  %v1679_v9 = vor.u32 %v1844_v8, %v1678_v7  ;;  %v1738_v10 = vld [vmem:[#allocation7 + $0x1a0] sm:$0xf] }
  0xb7   :  { %1049 = vmatpush.bf16.msra.mxu3 %v1631_v14  ;;  %v1858_v14 = vld [vmem:[#allocation7 + $0x180] sm:$0xf0] }
  0xb8   :  { %v1735_v15 = vor.u32 %v1858_v14, %v1734_v12 }
  0xb9   :  { %v660_v21 = vpop.f32.mrf.mxu2  ;;  %v636_v26 = vpop.f32.mrf.mxu0 }
  0xba   :  { %v673_v22 = vpop.f32.mrf.mxu3  ;;  %v649_v31 = vpop.f32.mrf.mxu1  ;;  %v661_v61 = vadd.f32 %v660_v21, %v648_v54 }
  0xbb   :  { %v1624_v31 = vld [vmem:[#allocation7 + $0x60] sm:$0xf0]  ;;  %1050 = vmatpush.bf16.msra.mxu3 %v1623_v30 }
  0xbc   :  { %v674_v4 = vadd.f32 %v673_v22, %v661_v61  ;;  %v1627_v32 = vor.u32 %v1830_v29, %v1624_v31 }
  0xbe   :  { %1063 = vmatpush.bf16.msrb.mxu0 %v1627_v32 }
  0xbf   :  { %1051 = vmatpush.bf16.msra.mxu3 %v1615_v36 }
  0xc1   :  { %v662_v35 = vpop.f32.mrf.mxu2 }
  0xc2   :  { %v675_v39 = vpop.f32.mrf.mxu3  ;;  %v1828_v35 = vld [vmem:[#allocation7 + $0x10] sm:$0xf] }
  0xc3   :  { %v1619_v38 = vor.u32 %v1828_v35, %v1616_v37  ;;  %v1706_v39 = vld [vmem:[#allocation7 + $0x19c] sm:$0xf] }
  0xc4   :  { %v1707_v42 = vor.u32 %v1851_v40, %v1706_v39  ;;  %v1854_v39 = vld [vmem:[#allocation7 + $0xa0] sm:$0xf0] }
  0xc5   :  { %1064 = vmatpush.bf16.msrb.mxu0 %v1619_v38  ;;  %v1718_v38 = vld [vmem:[#allocation7 + $0x88] sm:$0xf] }
  0xc6   :  { %1142 = vmatpush.bf16.msrb.mxu1 %v1707_v42  ;;  %v1719_v40 = vor.u32 %v1854_v39, %v1718_v38  ;;  %v1853_v42 = vld [vmem:[#allocation7 + $0x68] sm:$0xf0] }
  0xc7   :  { %v1715_v43 = vor.u32 %v1853_v42, %v1714_v41 }
  0xca   :  { %1143 = vmatpush.bf16.msrb.mxu1 %v1703_v44  ;;  %v1710_v44 = vld [vmem:[#allocation7 + $0x18] sm:$0xf] }
  0xcb   :  { %v1711_v46 = vor.u32 %v1852_v45, %v1710_v44 }
  0xce   :  { %1144 = vmatpush.bf16.msrb.mxu1 %v1699_v47  ;;  %v767_v47 = vperm.slane %v2046_v50, 2 }
  0xd1   :  { %v686_v5 = vpop.f32.mrf.mxu0 }
  0xd2   :  { %v699_v6 = vpop.f32.mrf.mxu1  ;;  %v687_v11 = vadd.f32 %v686_v5, %v674_v4  ;;  %1145 = vmatpush.bf16.msrb.mxu1 %v1695_v51  ;;  %v1682_v4 = vld [vmem:[#allocation7 + $0x4c] sm:$0xf]  ;;  %v1845_v5 = vld [vmem:[#allocation7 + $0x64] sm:$0xf0] }
  0xd4   :  { %v700_v16 = vadd.f32 %v699_v6, %v687_v11  ;;  %v1683_v6 = vor.u32 %v1845_v5, %v1682_v4  ;;  %v1859_v11 = vld [vmem:[#allocation7 + $0x1b8] sm:$0xf0] }
  0xd5   :  { %v1739_v13 = vor.u32 %v1859_v11, %v1738_v10 }
  0xd6   :  { %1146 = vmatpush.bf16.msrb.mxu1 %v1691_v0 }
  0xd7   :  { %1227 = vmatpush.bf16.msrb.mxu2 %v1739_v13 }
  0xd9   :  { %v712_v17 = vpop.f32.mrf.mxu2  ;;  %v688_v20 = vpop.f32.mrf.mxu0 }
  0xda   :  { %v725_v18 = vpop.f32.mrf.mxu3  ;;  %v713_v19 = vadd.f32 %v712_v17, %v700_v16  ;;  %v701_v21 = vpop.f32.mrf.mxu1  ;;  %1147 = vmatpush.bf16.msrb.mxu1 %v1687_v3  ;;  %v1730_v16 = vld [vmem:[#allocation7 + $0x130] sm:$0xf]  ;;  %v1857_v17 = vld [vmem:[#allocation7 + $0x148] sm:$0xf0]  ;;  %v1856_v20 = vld [vmem:[#allocation7 + $0x110] sm:$0xf0] }
  0xdb   :  { %1228 = vmatpush.bf16.msrb.mxu2 %v1735_v15 }
  0xdc   :  { %v726_v22 = vadd.f32 %v725_v18, %v713_v19  ;;  %v1731_v18 = vor.u32 %v1857_v17, %v1730_v16  ;;  %v1726_v19 = vld [vmem:[#allocation7 + $0xf8] sm:$0xf] }
  0xdd   :  { %v1727_v21 = vor.u32 %v1856_v20, %v1726_v19 }
  0xde   :  { %v729_v23 = vmax.f32 %v726_v22, 0.0  ;;  %1148 = vmatpush.bf16.msrb.mxu1 %v1683_v6  ;;  %v1722_v22 = vld [vmem:[#allocation7 + $0xc0] sm:$0xf] }
  0xdf   :  { %1229 = vmatpush.bf16.msrb.mxu2 %v1731_v18 }
  0xe0   :  { %v730_v24 = vpack.c.bf16 %v729_v23, %v729_v23  ;;  %v1855_v23 = vld [vmem:[#allocation7 + $0xd8] sm:$0xf0] }
  0xe1   :  { %v714_v25 = vpop.f32.mrf.mxu2 }
  0xe2   :  { %v727_v26 = vpop.f32.mrf.mxu3  ;;  %907 = vmatmul.bf16.vlgmr.msra.gmra.mxu0 %v730_v24  ;;  %920 = vmatmul.bf16.vlgmr.msra.gmra.mxu1 %v730_v24 }
  0xe3   :  { %933 = vmatmul.bf16.vlgmr.msra.gmra.mxu2 %v730_v24  ;;  %1149 = vmatpush.bf16.msrb.mxu1 %v1679_v9  ;;  %v1723_v24 = vor.u32 %v1855_v23, %v1722_v22  ;;  %v766_v26 = vperm.slane %v2046_v50, 1 }
  0xe4   :  { %1230 = vmatpush.bf16.msrb.mxu2 %v1727_v21 }
  0xe8   :  { %1231 = vmatpush.bf16.msrb.mxu2 %v1723_v24 }
  0xec   :  { %1232 = vmatpush.bf16.msrb.mxu2 %v1719_v40 }
  0xf0   :  { %1233 = vmatpush.bf16.msrb.mxu2 %v1715_v43 }
  0xf4   :  { %1234 = vmatpush.bf16.msrb.mxu2 %v1711_v46 }
 0x15f   :  { %v908_v53 = vpop.f32.mrf.mxu0  ;;  %v921_v54 = vpop.f32.mrf.mxu1 }
 0x160   :  { %v909_v55 = vadd.f32 %v908_v53, %v765_v52  ;;  %v922_v29 = vadd.f32 %v921_v54, %v766_v26 }
 0x162   :  { %v938_v56 = vmax.f32 %v909_v55, 0.0  ;;  %v939_v33 = vmax.f32 %v922_v29, 0.0 }
 0x164   :  { %v941_v57 = vpack.c.bf16 %v938_v56, %v938_v56 }
 0x166   :  { %v2049_v58 = vpop.f32.mrf.mxu2  ;;  %1052 = vmatmul.bf16.vlgmr.msra.gmra.mxu3 %v941_v57  ;;  %1065 = vmatmul.bf16.vlgmr.msrb.gmra.mxu0 %v941_v57 }
 0x167   :  { %v910_v59 = vpop.f32.mrf.mxu0  ;;  %v923_v60 = vpop.f32.mrf.mxu1  ;;  %v935_v51 = vadd.f32 %v2049_v58, %v767_v47 }
 0x169   :  { %v940_v55 = vmax.f32 %v935_v51, 0.0 }
 0x16e   :  { %v936_v61 = vpop.f32.mrf.mxu2 }
 0x1e3   :  { %v1066_v25 = vpop.f32.mrf.mxu0 }
 0x1e4   :  { %v1067_v53 = vadd.f32 %v1066_v25, %v961_v48 }
 0x1e6   :  { %v1071_v57 = vmax.f32 %v1067_v53, 0.0 }
 0x1e9   :  { %v1053_v30 = vpop.f32.mrf.mxu3 }
 0x1ea   :  { %v1054_v31 = vadd.f32 %v1053_v30, %v960_v28 }
 0x1eb   :  { %v1068_v32 = vpop.f32.mrf.mxu0 }
 0x1ec   :  { %v1070_v34 = vmax.f32 %v1054_v31, 0.0 }
 0x1ee   :  { %v1072_v35 = vadd.f32 %v1070_v34, %v939_v33 }
 0x1f0   :  { %v1073_v36 = vpack.c.bf16 %v1072_v35, %v1072_v35 }
 0x1f1   :  { %v1055_v37 = vpop.f32.mrf.mxu3 }
 0x1f2   :  { %1150 = vmatmul.bf16.vlgmr.msrb.gmra.mxu1 %v1073_v36 }
 0x26f   :  { %v1151_v52 = vpop.f32.mrf.mxu1 }
 0x270   :  { %v1152_v54 = vadd.f32 %v1870_v49, %v1151_v52 }
 0x272   :  { %v1155_v56 = vmax.f32 %v1152_v54, 0.0 }
 0x274   :  { %v1156_v59 = vadd.f32 %v1155_v56, %v940_v55 }
 0x276   :  { %v1157_v60 = vadd.f32 %v1156_v59, %v1071_v57 }
 0x277   :  { %v1153_v61 = vpop.f32.mrf.mxu1 }
 0x278   :  { %v1158_v62 = vpack.c.bf16 %v1157_v60, %v1157_v60 }
 0x27a   :  { %1235 = vmatmul.bf16.vlgmr.msrb.gmra.mxu2 %v1158_v62 }
 0x2fd   :  { %v1236_v50 = vpop.f32.mrf.mxu2 }
 0x2fe   :  { %v1237_v58 = vadd.f32 %v1871_v63, %v1236_v50 }
 0x300   :  { %1240 = vst [vmem:[#allocation10] sm:$0xff] %v1237_v58 }
 0x301   :  { %1251 = dma.vmem_to_hbm [thread:$0]  %s1247_s3, 128, %s1249_s13, [#allocation4]  }
 0x305   :  { %v1238_v0 = vpop.f32.mrf.mxu2 }
 0x306   :  { %1998 = dma.done.wait [#allocation4], 128  }
 0x307   :  { %1999 = vsyncadd [#allocation4], 4294967168 }
 0x308   :  { %1256 = vsyncpa [#allocation3], 1 }
 0x309   :  { %1257 = vsyncpa [#allocation6], 1 }
 0x30a   :  { %1258 = vsyncpa [#allocation9], 1 }
 0x30b   :  { %1259 = vsyncpa [#allocation4], 1 }

</bundles_post_ra>
